<compile_context>
chip_gen: v7x
topology: tpu7x:2x2x1
jax: 0.10.0
libtpu: 0.0.40
codegen_flags: <defaults>
</compile_context>

<pallas_src>
import jax
import jax.numpy as jnp
from jax import lax
from jax.experimental import pallas as pl
from jax.experimental.pallas import tpu as pltpu

LANE = 128                           # vreg lane width (last dim)
TARGET_TILE_BYTES = 2 * 1024 * 1024  # ~2 MiB per input tile per grid step
VMEM_LIMIT_BYTES = 32 * 1024 * 1024  # 3 inputs x 2 bufs x 2 MiB = 12 MiB << 32 MiB


def _default_num_splits():
    """Use 2 splits only on chips with 2 independent TensorCores (v7x)."""
    try:
        kind = jax.devices()[0].device_kind.lower()
    except Exception:
        return 1
    return 2 if ("v7" in kind or "7x" in kind) else 1


def _make_kernel(rows, tile_rows, tiles_per_split, last_tile,
                 has_partial_last, has_overhang):
    """All arguments are trace-time Python ints/bools."""
    groups = tile_rows // 8

    def kernel(x_ref, y_ref, w_ref, o_ref):
        c = pl.program_id(0)   # split (parallel) index
        i = pl.program_id(1)   # tile within split (reduction axis)

        # Zero the resident per-split accumulator at the start of each sweep.
        @pl.when(i == 0)
        def _():
            o_ref[...] = jnp.zeros_like(o_ref)

        def accumulate(mask_rows):
            x = x_ref[...].astype(jnp.float32)
            y = y_ref[...].astype(jnp.float32)
            w = w_ref[...].astype(jnp.float32)
            d = x - y
            val = d * d * w
            if mask_rows:
                # Edge tile only: zero rows past the logical end BEFORE folding.
                t = c * tiles_per_split + i
                row_ids = t * tile_rows + lax.broadcasted_iota(
                    jnp.int32, (tile_rows, LANE), 0)
                val = jnp.where(row_ids < rows, val, 0.0)
            # VPU-only fold: (tile_rows,128) -> (8,128), no cross-lane work.
            partial = val.reshape(groups, 8, LANE).sum(axis=0)
            o_ref[...] += partial[None, :, :]

        if not (has_partial_last or has_overhang):
            # Common path: every tile is full and unique -> no mask, no gating.
            accumulate(False)
        else:
            t = c * tiles_per_split + i
            if has_partial_last:
                @pl.when(t < last_tile)
                def _():
                    accumulate(False)

                @pl.when(t == last_tile)
                def _():
                    accumulate(True)
            else:
                # Only clamped overhang tiles exist; the last tile is full.
                @pl.when(t <= last_tile)
                def _():
                    accumulate(False)
            # t > last_tile: clamped duplicate tile of an uneven split -> skip.

    return kernel


def my_mse_weighted_loss(x, y, weight, *, target_tile_bytes=None,
                         num_splits=None):
    """JAX/Pallas equivalent of My_MSE_Weighted_Loss.forward."""
    if target_tile_bytes is None:
        target_tile_bytes = TARGET_TILE_BYTES
    if num_splits is None:
        num_splits = _default_num_splits()

    # Only materialize a broadcast if shapes actually differ (the common
    # same-shape case streams the arrays as-is, no extra HBM passes).
    # TODO(synk): stream broadcastable (scalar / per-channel) weights small
    # instead of materializing them when shapes differ.
    if not (x.shape == y.shape == weight.shape):
        x, y, weight = jnp.broadcast_arrays(x, y, weight)

    xf = x.reshape(-1)
    yf = y.reshape(-1)
    wf = weight.reshape(-1)
    n = xf.size
    if n == 0:
        return jnp.float32(0.0)

    # Reshape the flat stream to (rows, 128).  Only when n is not a multiple
    # of 128 (rare for NN tensors) do we pad the <128-element remainder; the
    # zero padding contributes (0-0)^2 * 0 == 0.
    rem = n % LANE
    if rem:
        pad = LANE - rem
        xf = jnp.pad(xf, (0, pad))
        yf = jnp.pad(yf, (0, pad))
        wf = jnp.pad(wf, (0, pad))
    rows = xf.size // LANE
    x2 = xf.reshape(rows, LANE)
    y2 = yf.reshape(rows, LANE)
    w2 = wf.reshape(rows, LANE)

    # Dtype-aware tile sizing: ~target_tile_bytes per input per grid step
    # (4096 rows f32 / 8192 rows bf16), rounded to a sublane multiple and
    # capped for small inputs.
    max_itemsize = max(a.dtype.itemsize for a in (x2, y2, w2))
    cap_rows = max(8, (target_tile_bytes // (LANE * max_itemsize)) // 8 * 8)
    tile_rows = min(cap_rows, ((rows + 7) // 8) * 8)

    num_tiles = pl.cdiv(rows, tile_rows)
    num_splits = max(1, min(num_splits, num_tiles))
    tiles_per_split = pl.cdiv(num_tiles, num_splits)

    last_tile = num_tiles - 1
    has_partial_last = (rows % tile_rows) != 0
    has_overhang = num_splits * tiles_per_split > num_tiles

    if has_overhang:
        # Clamp so overhang steps never issue out-of-bounds DMAs; their compute
        # is skipped in-kernel via pl.when.
        def in_map(c, i):
            return (jnp.minimum(c * tiles_per_split + i, last_tile), 0)
    else:
        def in_map(c, i):
            return (c * tiles_per_split + i, 0)

    tile_spec = pl.BlockSpec((tile_rows, LANE), in_map)

    in_bytes = sum(a.size * a.dtype.itemsize for a in (x2, y2, w2))
    cost = pl.CostEstimate(
        flops=4 * n,
        transcendentals=0,
        bytes_accessed=in_bytes + num_splits * 8 * LANE * 4,
    )

    out = pl.pallas_call(
        _make_kernel(rows, tile_rows, tiles_per_split, last_tile,
                     has_partial_last, has_overhang),
        out_shape=jax.ShapeDtypeStruct((num_splits, 8, LANE), jnp.float32),
        grid_spec=pltpu.PrefetchScalarGridSpec(
            num_scalar_prefetch=0,
            grid=(num_splits, tiles_per_split),
            in_specs=[tile_spec, tile_spec, tile_spec],
            out_specs=pl.BlockSpec((1, 8, LANE), lambda c, i: (c, 0, 0)),
        ),
        compiler_params=pltpu.CompilerParams(
            dimension_semantics=("parallel", "arbitrary"),
            vmem_limit_bytes=VMEM_LIMIT_BYTES,
        ),
        cost_estimate=cost,
    )(x2, y2, w2)

    # Tiny final reduce (num_splits * 8 * 128 partials) in plain XLA.
    return jnp.sum(out)


if __name__ == "__main__":
    key = jax.random.PRNGKey(0)
    kx, ky, kw = jax.random.split(key, 3)

    # 1) Small NCHW-style tensor (matches module usage); single full tile.
    shape = (2, 4, 16, 16)
    x = jax.random.normal(kx, shape, dtype=jnp.float32)
    y = jax.random.normal(ky, shape, dtype=jnp.float32)
    w = jax.random.uniform(kw, shape, dtype=jnp.float32)
    loss = my_mse_weighted_loss(x, y, w)
    jax.block_until_ready(loss)
    ref = jnp.sum((x - y) ** 2 * w)
    assert jnp.allclose(loss, ref, rtol=1e-5, atol=1e-5), (loss, ref)

    # 2) Odd element count (exercises the sub-128 tail pad + masked edge tile).
    shape2 = (3, 5, 7)
    x2 = jax.random.normal(kx, shape2, dtype=jnp.float32)
    y2 = jax.random.normal(ky, shape2, dtype=jnp.float32)
    w2 = jax.random.uniform(kw, shape2, dtype=jnp.float32)
    loss2 = my_mse_weighted_loss(x2, y2, w2)
    jax.block_until_ready(loss2)
    ref2 = jnp.sum((x2 - y2) ** 2 * w2)
    assert jnp.allclose(loss2, ref2, rtol=1e-5, atol=1e-5), (loss2, ref2)

    # 3) bf16 inputs, small tile override to force multiple tiles with a
    #    partial (masked) last tile on the reduction axis.
    shape3 = (4, 64, 160)
    x3 = jax.random.normal(kx, shape3, dtype=jnp.bfloat16)
    y3 = jax.random.normal(ky, shape3, dtype=jnp.bfloat16)
    w3 = jax.random.uniform(kw, shape3, dtype=jnp.bfloat16)
    loss3 = my_mse_weighted_loss(x3, y3, w3, target_tile_bytes=64 * 1024)
    jax.block_until_ready(loss3)
    ref3 = jnp.sum((x3.astype(jnp.float32) - y3.astype(jnp.float32)) ** 2
                   * w3.astype(jnp.float32))
    assert jnp.allclose(loss3, ref3, rtol=1e-3, atol=1e-2), (loss3, ref3)

    # 4) Forced 2-way split with an odd tile count (exercises the clamped
    #    overhang tile being skipped via pl.when).
    shape4 = (6, 64, 128)
    x4 = jax.random.normal(kx, shape4, dtype=jnp.float32)
    y4 = jax.random.normal(ky, shape4, dtype=jnp.float32)
    w4 = jax.random.uniform(kw, shape4, dtype=jnp.float32)
    loss4 = my_mse_weighted_loss(x4, y4, w4, target_tile_bytes=64 * 1024,
                                 num_splits=2)
    jax.block_until_ready(loss4)
    ref4 = jnp.sum((x4 - y4) ** 2 * w4)
    assert jnp.allclose(loss4, ref4, rtol=1e-5, atol=1e-5), (loss4, ref4)

    print("KERNEL_OK")
</pallas_src>

<mosaic_0001>
module attributes {stable_mosaic.version = 11 : i64} {
  func.func @kernel(%arg0: i32, %arg1: i32, %arg2: memref<16x128xf32, #tpu.memory_space<vmem>>, %arg3: memref<16x128xf32, #tpu.memory_space<vmem>>, %arg4: memref<16x128xf32, #tpu.memory_space<vmem>>, %arg5: memref<1x8x128xf32, #tpu.memory_space<vmem>>) attributes {dimension_semantics = [#tpu.dimension_semantics<parallel>, #tpu.dimension_semantics<arbitrary>], iteration_bounds = array<i64: 1, 1>, scalar_prefetch = 0 : i64, scratch_operands = 0 : i64, tpu.core_type = #tpu.core_type<tc>, window_params = [{transform_indices = @transform_0, window_bounds = array<i64: 16, 128>}, {transform_indices = @transform_1, window_bounds = array<i64: 16, 128>}, {transform_indices = @transform_2, window_bounds = array<i64: 16, 128>}, {transform_indices = @transform_3, window_bounds = array<i64: 1, 8, 128>}]} {
    %c0_i32 = arith.constant 0 : i32
    %0 = arith.cmpi eq, %arg1, %c0_i32 : i32
    %1 = arith.extui %0 : i1 to i32
    %c0_i32_0 = arith.constant 0 : i32
    %2 = arith.cmpi ne, %1, %c0_i32_0 : i32
    scf.if %2 {
      %cst_12 = arith.constant 0.000000e+00 : f32
      %15 = vector.broadcast %cst_12 : f32 to vector<1x8x128xf32>
      %c0_13 = arith.constant 0 : index
      %c0_14 = arith.constant 0 : index
      %c0_15 = arith.constant 0 : index
      %16 = vector.load %arg5[%c0_13, %c0_14, %c0_15] : memref<1x8x128xf32, #tpu.memory_space<vmem>>, vector<1x8x128xf32>
      tpu.vector_store %arg5[%c0_13, %c0_14, %c0_15], %15 {strides = array<i32>} : memref<1x8x128xf32, #tpu.memory_space<vmem>>, vector<1x8x128xf32>,
    } else {
    }
    %c0 = arith.constant 0 : index
    %c0_1 = arith.constant 0 : index
    %3 = vector.load %arg2[%c0, %c0_1] : memref<16x128xf32, #tpu.memory_space<vmem>>, vector<16x128xf32>
    %c0_2 = arith.constant 0 : index
    %c0_3 = arith.constant 0 : index
    %4 = vector.load %arg3[%c0_2, %c0_3] : memref<16x128xf32, #tpu.memory_space<vmem>>, vector<16x128xf32>
    %c0_4 = arith.constant 0 : index
    %c0_5 = arith.constant 0 : index
    %5 = vector.load %arg4[%c0_4, %c0_5] : memref<16x128xf32, #tpu.memory_space<vmem>>, vector<16x128xf32>
    %6 = arith.subf %3, %4 : vector<16x128xf32>
    %7 = arith.mulf %6, %6 : vector<16x128xf32>
    %8 = arith.mulf %7, %5 : vector<16x128xf32>
    %9 = vector.shape_cast %8 : vector<16x128xf32> to vector<2x8x128xf32>
    %cst = arith.constant dense<0.000000e+00> : vector<8x128xf32>
    %10 = vector.multi_reduction <add>, %9, %cst [0] : vector<2x8x128xf32> to vector<8x128xf32>
    %c0_6 = arith.constant 0 : index
    %c0_7 = arith.constant 0 : index
    %c0_8 = arith.constant 0 : index
    %11 = vector.load %arg5[%c0_6, %c0_7, %c0_8] : memref<1x8x128xf32, #tpu.memory_space<vmem>>, vector<1x8x128xf32>
    %12 = vector.shape_cast %10 : vector<8x128xf32> to vector<1x8x128xf32>
    %13 = arith.addf %11, %12 : vector<1x8x128xf32>
    %c0_9 = arith.constant 0 : index
    %c0_10 = arith.constant 0 : index
    %c0_11 = arith.constant 0 : index
    %14 = vector.load %arg5[%c0_9, %c0_10, %c0_11] : memref<1x8x128xf32, #tpu.memory_space<vmem>>, vector<1x8x128xf32>
    tpu.vector_store %arg5[%c0_9, %c0_10, %c0_11], %13 {strides = array<i32>} : memref<1x8x128xf32, #tpu.memory_space<vmem>>, vector<1x8x128xf32>,
    return
  }
  func.func @transform_0(%arg0: i32, %arg1: i32) -> (i32, i32) {
    %c1_i32 = arith.constant 1 : i32
    %0 = arith.muli %arg0, %c1_i32 : i32
    %1 = arith.addi %0, %arg1 : i32
    %c0_i32 = arith.constant 0 : i32
    %c0_i32_0 = arith.constant 0 : i32
    return %1, %c0_i32 : i32, i32
  }
  func.func @transform_1(%arg0: i32, %arg1: i32) -> (i32, i32) {
    %c1_i32 = arith.constant 1 : i32
    %0 = arith.muli %arg0, %c1_i32 : i32
    %1 = arith.addi %0, %arg1 : i32
    %c0_i32 = arith.constant 0 : i32
    %c0_i32_0 = arith.constant 0 : i32
    return %1, %c0_i32 : i32, i32
  }
  func.func @transform_2(%arg0: i32, %arg1: i32) -> (i32, i32) {
    %c1_i32 = arith.constant 1 : i32
    %0 = arith.muli %arg0, %c1_i32 : i32
    %1 = arith.addi %0, %arg1 : i32
    %c0_i32 = arith.constant 0 : i32
    %c0_i32_0 = arith.constant 0 : i32
    return %1, %c0_i32 : i32, i32
  }
  func.func @transform_3(%arg0: i32, %arg1: i32) -> (i32, i32, i32) {
    %c0_i32 = arith.constant 0 : i32
    %c0_i32_0 = arith.constant 0 : i32
    %c0_i32_1 = arith.constant 0 : i32
    return %arg0, %c0_i32, %c0_i32_0 : i32, i32, i32
  }
}

</mosaic_0001>

<bundles_post_ra>
// kernel: tpu_custom_call.1
= control target key start
LH: loop header
LB: loop body
LE: loop exit
PB: predicated region body
PF: predicated region fallthrough
CT: control target
= control target key end

     0   :  { %8 = vsyncpa [#allocation3], 0  ;;  %s302_s0 = inlined_call_operand.hbm [shape: f32[16,128], index: 0, kind: input, shape index: {}]   ;;  %s303_s1 = inlined_call_operand.hbm [shape: f32[16,128], index: 1, kind: input, shape index: {}]   ;;  %s304_s2 = inlined_call_operand.hbm [shape: f32[16,128], index: 2, kind: input, shape index: {}]   ;;  %s305_s3 = inlined_call_operand.hbm [shape: f32[1,8,128], index: 3, kind: output, shape index: {}]  }
   0x1   :  { %9 = vsyncpa [#allocation6], 0 }
   0x2   :  { %10 = vsyncpa [#allocation4], 0  ;;  %s212_s12 = smov [#allocation5]   ;;  %s213_s14 = smov [#allocation2]  }
   0x3   :  { %s36_s13 = sshll.u32 %s212_s12, 4  ;;  %s20_s15 = sshll.u32 %s213_s14, 4  ;;  %s37_s13 = int_to_ptr.vmem [resolvable:$true] %s36_s13  ;;  %s238_s15 = int_to_ptr.vmem [resolvable:$true] %s20_s15 }
   0x4   :  { %s118_s18 = scalar_lea.hbm %s303_s1, 256 }
   0x5   :  { %p119_p0 = scmp.ne.s32.totalorder %s303_s1, %s118_s18  ;;  %p122_p1 = scmp.lt.u32.totalorder %s118_s18, %s303_s1 }
   0x7   :  { %p124_p2 = pnand %p122_p1, %p119_p0 }
   0x9   :  { %127 = shalt.err (!%p124_p2)
}
   0xa   :  { %s128_s23 = scalar_lea.vmem %s37_s13, 256  ;;  %p133_p4 = scmp.lt.s32.totalorder %s37_s13, %s37_s13 }
   0xb   :  { %p129_p3 = scmp.ne.s32.totalorder %s37_s13, %s128_s23  ;;  %p134_p5 = scmp.lt.s32.totalorder %s128_s23, %s128_s23 }
   0xd   :  { %p135_p6 = por %p134_p5, %p133_p4 }
   0xf   :  { %p136_p7 = pnand %p135_p6, %p129_p3 }
  0x11   :  { %139 = shalt.err (!%p136_p7)
}
  0x12   :  { %s214_s24 = smov 128   ;;  %s215_s25 = smov 8  }
  0x13   :  { %42 = dma.hbm_to_vmem [thread:$0]  %s303_s1, 256, %s37_s13, [#allocation6], %s214_s24, %s214_s24, %s215_s25  }
  0x14   :  { %s140_s30 = scalar_lea.hbm %s302_s0, 256 }
  0x15   :  { %p141_p8 = scmp.ne.s32.totalorder %s302_s0, %s140_s30  ;;  %p144_p9 = scmp.lt.u32.totalorder %s140_s30, %s302_s0 }
  0x17   :  { %p146_p10 = pnand %p144_p9, %p141_p8 }
  0x19   :  { %149 = shalt.err (!%p146_p10)
}
  0x1a   :  { %s150_s8 = scalar_lea.vmem %s238_s15, 256  ;;  %p155_p12 = scmp.lt.s32.totalorder %s238_s15, %s238_s15 }
  0x1b   :  { %p151_p11 = scmp.ne.s32.totalorder %s238_s15, %s150_s8  ;;  %p156_p13 = scmp.lt.s32.totalorder %s150_s8, %s150_s8 }
  0x1d   :  { %p157_p0 = por %p156_p13, %p155_p12 }
  0x1f   :  { %p158_p1 = pnand %p157_p0, %p151_p11 }
  0x21   :  { %161 = shalt.err (!%p158_p1)
}
  0x22   :  { %26 = dma.hbm_to_vmem [thread:$0]  %s302_s0, 256, %s238_s15, [#allocation3], %s214_s24, %s214_s24, %s215_s25  }
  0x23   :  { %s216_s10 = smov [#allocation7]   ;;  %s162_s14 = scalar_lea.hbm %s304_s2, 256 }
  0x24   :  { %s52_s11 = sshll.u32 %s216_s10, 4  ;;  %p163_p2 = scmp.ne.s32.totalorder %s304_s2, %s162_s14  ;;  %s53_s11 = int_to_ptr.vmem [resolvable:$true] %s52_s11 }
  0x25   :  { %p166_p3 = scmp.lt.u32.totalorder %s162_s14, %s304_s2 }
  0x27   :  { %p168_p4 = pnand %p166_p3, %p163_p2 }
  0x29   :  { %171 = shalt.err (!%p168_p4)
}
  0x2a   :  { %s172_s20 = scalar_lea.vmem %s53_s11, 256  ;;  %p177_p6 = scmp.lt.s32.totalorder %s53_s11, %s53_s11 }
  0x2b   :  { %p173_p5 = scmp.ne.s32.totalorder %s53_s11, %s172_s20  ;;  %p178_p7 = scmp.lt.s32.totalorder %s172_s20, %s172_s20 }
  0x2d   :  { %p179_p8 = por %p178_p7, %p177_p6 }
  0x2f   :  { %p180_p9 = pnand %p179_p8, %p173_p5 }
  0x31   :  { %183 = shalt.err (!%p180_p9)
}
  0x32   :  { %58 = dma.hbm_to_vmem [thread:$0]  %s304_s2, 256, %s53_s11, [#allocation6], %s214_s24, %s214_s24, %s215_s25  }
  0x33   :  { %206 = dma.done.wait [#allocation3], 256  }
  0x34   :  { %207 = vsyncadd [#allocation3], 4294967040 }
  0x35   :  { %208 = dma.done.wait [#allocation6], 512  }
  0x36   :  { %209 = vsyncadd [#allocation6], 4294966784  ;;  %v79_v0 = vld [vmem:[#allocation2] sm:$0xff]  ;;  %v80_v1 = vld [vmem:[#allocation2 + $0x8] sm:$0xff]  ;;  %s217_s21 = smov [#allocation8]  }
  0x37   :  { %v81_v2 = vld [vmem:[#allocation5] sm:$0xff]  ;;  %v82_v3 = vld [vmem:[#allocation5 + $0x8] sm:$0xff]  ;;  %v83_v5 = vld [vmem:[#allocation7] sm:$0xff]  ;;  %s101_s22 = sshll.u32 %s217_s21, 4  ;;  %s102_s22 = int_to_ptr.vmem [resolvable:$true] %s101_s22 }
  0x38   :  { %v85_v4 = vsub.f32 %v79_v0, %v81_v2  ;;  %v86_v6 = vsub.f32 %v80_v1, %v82_v3  ;;  %v84_v7 = vld [vmem:[#allocation7 + $0x8] sm:$0xff]  ;;  %s184_s2 = scalar_lea.vmem %s102_s22, 128  ;;  %p189_p11 = scmp.lt.s32.totalorder %s102_s22, %s102_s22 }
  0x39   :  { %p185_p10 = scmp.ne.s32.totalorder %s102_s22, %s184_s2  ;;  %p190_p12 = scmp.lt.s32.totalorder %s184_s2, %s184_s2 }
  0x3a   :  { %v87_v8 = vmul.f32 %v85_v4, %v85_v4  ;;  %v88_v9 = vmul.f32 %v86_v6, %v86_v6 }
  0x3b   :  { %p191_p13 = por %p190_p12, %p189_p11 }
  0x3c   :  { %v89_v10 = vmul.f32 %v87_v8, %v83_v5  ;;  %v90_v11 = vmul.f32 %v88_v9, %v84_v7 }
  0x3d   :  { %p192_p0 = pnand %p191_p13, %p185_p10 }
  0x3e   :  { %v91_v12 = vadd.f32 %v90_v11, %v89_v10 }
  0x40   :  { %94 = vst [vmem:[#allocation8] sm:$0xff] %v91_v12 }
  0x41   :  { %195 = shalt.err (!%p192_p0)
}
  0x42   :  { %s196_s25 = scalar_lea.hbm %s305_s3, 128 }
  0x43   :  { %p197_p1 = scmp.ne.s32.totalorder %s305_s3, %s196_s25  ;;  %p200_p2 = scmp.lt.u32.totalorder %s196_s25, %s305_s3 }
  0x45   :  { %p202_p3 = pnand %p200_p2, %p197_p1 }
  0x47   :  { %205 = shalt.err (!%p202_p3)
}
  0x48   :  { %104 = dma.vmem_to_hbm [thread:$0]  %s102_s22, 128, %s305_s3, [#allocation4]  }
  0x49   :  { %210 = dma.done.wait [#allocation4], 128  }
  0x4a   :  { %211 = vsyncadd [#allocation4], 4294967168 }
  0x4b   :  { %108 = vsyncpa [#allocation3], 1 }
  0x4c   :  { %109 = vsyncpa [#allocation6], 1 }
  0x4d   :  { %110 = vsyncpa [#allocation4], 1 }

</bundles_post_ra>
